<compile_context>
chip_gen: v7x
topology: tpu7x:2x2x1
jax: 0.10.0
libtpu: 0.0.40
codegen_flags: <defaults>
</compile_context>

<pallas_src>
import jax
import jax.numpy as jnp
from jax.experimental import pallas as pl
from jax.experimental.pallas import tpu as pltpu

P = 53          # vocabulary size (modulus of the grokking task)
D_EMBED = 128   # embedding dim
HIDDEN = 256    # hidden width

K_PAD = 128        # padded contraction dim: 2*P one-hot lanes + 1 bias lane = 107 -> 128
N_PAD = 128        # padded output sublane dim: P = 53 -> 128
BIAS_ROW = 2 * P   # always-hot one-hot row that injects b1


def _round_up(n, m):
    return ((n + m - 1) // m) * m


def _cdiv(a, b):
    return -(-a // b)


# ----------------------------------------------------------------------------
# Kernel: fused lookup + concat + linear1(+b1) + ReLU + linear2, batch in lanes.
# ----------------------------------------------------------------------------
def _embed_concat_ff_kernel(idx1_ref, idx2_ref, ew_t_ref, w2_ref, b2_ref, o_ref):
    tb = o_ref.shape[1]                                            # batch tile (lanes)
    row = jax.lax.broadcasted_iota(jnp.int32, (K_PAD, tb), 0)      # sublane index
    i1 = idx1_ref[...]                                             # (1, tb)
    i2 = idx2_ref[...] + P                                         # (1, tb)
    # Combined one-hot (transposed): row x1 hot, row P+x2 hot, bias row always hot.
    hot = (row == i1) | (row == i2) | (row == BIAS_ROW)
    oh_t = hot.astype(jnp.bfloat16)                                # (K_PAD, tb)

    # Fused lookup + concat + linear1 (+ b1 via the always-hot lane):
    #   bf16 (HIDDEN, K_PAD) @ bf16 (K_PAD, tb) -> f32 (HIDDEN, tb) on the MXU.
    h_t = jnp.dot(ew_t_ref[...], oh_t, preferred_element_type=jnp.float32)
    h_t = jnp.maximum(h_t, 0.0).astype(jnp.bfloat16)               # ReLU, bf16 for MXU

    # linear2: bf16 (N_PAD, HIDDEN) @ bf16 (HIDDEN, tb) -> f32, lane-dense store.
    o_ref[...] = (jnp.dot(w2_ref[...], h_t, preferred_element_type=jnp.float32)
                  + b2_ref[...])


# ----------------------------------------------------------------------------
# One-time weight fold/pad (hoisted out of the per-call path).
# ----------------------------------------------------------------------------
def prepare_params(embed_w, w1, b1, w2, b2):
    """Fold the embedding table and b1 into linear1, pad everything to 128-lane
    tiles, and quantize the MXU operands to bf16.  Call once; reuse."""
    hp = jax.lax.Precision.HIGHEST
    w1t = w1.T.astype(jnp.float32)                                   # (2D, HIDDEN)
    ew = jnp.concatenate(
        [jnp.dot(embed_w, w1t[:D_EMBED], precision=hp),              # (P, HIDDEN)
         jnp.dot(embed_w, w1t[D_EMBED:], precision=hp)], axis=0)     # (2P, HIDDEN)
    ew_pad = (jnp.zeros((K_PAD, HIDDEN), jnp.float32)
              .at[:2 * P].set(ew)
              .at[BIAS_ROW].set(b1))                                 # bias lane
    ew_t = ew_pad.T.astype(jnp.bfloat16)                             # (HIDDEN, K_PAD)
    w2_pad = (jnp.zeros((N_PAD, HIDDEN), jnp.float32)
              .at[:P].set(w2).astype(jnp.bfloat16))                  # (N_PAD, HIDDEN)
    b2_col = jnp.zeros((N_PAD, 1), jnp.float32).at[:P, 0].set(b2)    # (N_PAD, 1)
    return ew_t, w2_pad, b2_col


def _plan_tiles(B, tile_b):
    """Choose (#tiles, tile width) so tiles are lane-dense (multiple of 128),
    the padded-batch fraction stays small, and v7x gets >= 2 parallel tiles."""
    n_tiles = max(1, _cdiv(B, tile_b))
    if B >= 256:
        n_tiles = max(n_tiles, 2)          # keep both v7x TensorCores busy
    tb = _round_up(_cdiv(B, n_tiles), 128)
    return n_tiles, tb, n_tiles * tb


# ----------------------------------------------------------------------------
# Forward wrapper (cheap per-call work only: index pad + pallas_call + unpad).
# ----------------------------------------------------------------------------
def embed_concat_ff(x1, x2, ew_t, w2_pad, b2_col, *, tile_b=2048):
    """x1, x2: (B,) int in [0, P).  Folded weights come from prepare_params()."""
    B = x1.shape[0]
    n_tiles, tb, b_pad = _plan_tiles(B, tile_b)

    # Lane-dense index layout: one row, batch along lanes.
    idx1 = jnp.zeros((1, b_pad), jnp.int32).at[0, :B].set(x1.astype(jnp.int32))
    idx2 = jnp.zeros((1, b_pad), jnp.int32).at[0, :B].set(x2.astype(jnp.int32))

    out_t = pl.pallas_call(
        _embed_concat_ff_kernel,
        out_shape=jax.ShapeDtypeStruct((N_PAD, b_pad), jnp.float32),
        grid=(n_tiles,),
        in_specs=[
            pl.BlockSpec((1, tb), lambda i: (0, i)),             # idx1 (lane-dense)
            pl.BlockSpec((1, tb), lambda i: (0, i)),             # idx2 (lane-dense)
            pl.BlockSpec((HIDDEN, K_PAD), lambda i: (0, 0)),     # folded EW^T (resident)
            pl.BlockSpec((N_PAD, HIDDEN), lambda i: (0, 0)),     # padded W2 (resident)
            pl.BlockSpec((N_PAD, 1), lambda i: (0, 0)),          # padded b2 (resident)
        ],
        out_specs=pl.BlockSpec((N_PAD, tb), lambda i: (0, i)),
        compiler_params=pltpu.CompilerParams(
            dimension_semantics=("parallel",),
            vmem_limit_bytes=64 << 20),
    )(idx1, idx2, ew_t, w2_pad, b2_col)

    # Drop padding and flip back to (B, P) — tiny (53, B) slice/transpose.
    return out_t[:P, :B].T


# ----------------------------------------------------------------------------
# References and demo.
# ----------------------------------------------------------------------------
def _xavier_normal(key, shape):
    fan_out, fan_in = shape
    std = (2.0 / (fan_in + fan_out)) ** 0.5
    return std * jax.random.normal(key, shape, dtype=jnp.float32)


def _reference_f32(x1, x2, embed_w, w1, b1, w2, b2):
    hp = jax.lax.Precision.HIGHEST
    e1 = embed_w[x1]
    e2 = embed_w[x2]
    x = jnp.concatenate([e1, e2], axis=1)
    h = jnp.maximum(jnp.dot(x, w1.T, precision=hp) + b1, 0.0)
    return jnp.dot(h, w2.T, precision=hp) + b2


def _reference_matched(x1, x2, ew_t, w2_pad, b2_col):
    """Same bf16-operand / f32-accumulate quantization path as the kernel."""
    ew = ew_t.astype(jnp.float32).T                      # (K_PAD, HIDDEN)
    h = ew[x1] + ew[x2 + P] + ew[BIAS_ROW]               # one-hot matmul, exact
    h = jnp.maximum(h, 0.0).astype(jnp.bfloat16)
    o = jnp.dot(h, w2_pad.T, preferred_element_type=jnp.float32) + b2_col[:, 0]
    return o[:, :P]


if __name__ == "__main__":
    key = jax.random.PRNGKey(0)
    k_emb, k_w1, k_w2, k_x1, k_x2 = jax.random.split(key, 5)

    # Deterministic parameter init (matches module __init__ shapes + xavier_normal).
    embed_w = _xavier_normal(k_emb, (P, D_EMBED))          # nn.Embedding(P, D_EMBED)
    w1 = _xavier_normal(k_w1, (HIDDEN, 2 * D_EMBED))       # nn.Linear(2*D_EMBED, HIDDEN)
    b1 = jnp.zeros((HIDDEN,), jnp.float32)
    w2 = _xavier_normal(k_w2, (P, HIDDEN))                 # nn.Linear(HIDDEN, P)
    b2 = jnp.zeros((P,), jnp.float32)

    # One-time weight fold/pad/quantize (hoisted out of the per-call path).
    ew_t, w2_pad, b2_col = prepare_params(embed_w, w1, b1, w2, b2)
    fwd = jax.jit(embed_concat_ff)

    # Small demo batch (single 128-lane tile).
    B = 8
    x1 = jax.random.randint(k_x1, (B,), 0, P, dtype=jnp.int32)
    x2 = jax.random.randint(k_x2, (B,), 0, P, dtype=jnp.int32)
    out = jax.block_until_ready(fwd(x1, x2, ew_t, w2_pad, b2_col))
    assert out.shape == (B, P)
    assert jnp.allclose(out, _reference_matched(x1, x2, ew_t, w2_pad, b2_col),
                        atol=1e-3, rtol=1e-3), "mismatch vs bf16-matched reference (B=8)"
    assert jnp.allclose(out, _reference_f32(x1, x2, embed_w, w1, b1, w2, b2),
                        atol=5e-2, rtol=5e-2), "mismatch vs f32 reference (B=8)"

    # Larger batch exercising the multi-tile parallel grid (2 tiles of 384 lanes).
    B2 = 600
    kx1b, kx2b = jax.random.split(jax.random.PRNGKey(1))
    x1b = jax.random.randint(kx1b, (B2,), 0, P, dtype=jnp.int32)
    x2b = jax.random.randint(kx2b, (B2,), 0, P, dtype=jnp.int32)
    out2 = jax.block_until_ready(fwd(x1b, x2b, ew_t, w2_pad, b2_col))
    assert out2.shape == (B2, P)
    assert jnp.allclose(out2, _reference_matched(x1b, x2b, ew_t, w2_pad, b2_col),
                        atol=1e-3, rtol=1e-3), "mismatch vs bf16-matched reference (B=600)"
    assert jnp.allclose(out2, _reference_f32(x1b, x2b, embed_w, w1, b1, w2, b2),
                        atol=5e-2, rtol=5e-2), "mismatch vs f32 reference (B=600)"

    print("KERNEL_OK")
</pallas_src>

<mosaic_0001>
module attributes {stable_mosaic.version = 11 : i64} {
  func.func @_embed_concat_ff_kernel(%arg0: i32, %arg1: memref<1x128xi32, #tpu.memory_space<vmem>>, %arg2: memref<1x128xi32, #tpu.memory_space<vmem>>, %arg3: memref<256x128xbf16, #tpu.memory_space<vmem>>, %arg4: memref<128x256xbf16, #tpu.memory_space<vmem>>, %arg5: memref<128x1xf32, #tpu.memory_space<vmem>>, %arg6: memref<128x128xf32, #tpu.memory_space<vmem>>) attributes {dimension_semantics = [#tpu.dimension_semantics<parallel>], iteration_bounds = array<i64: 1>, scalar_prefetch = 0 : i64, scratch_operands = 0 : i64, tpu.core_type = #tpu.core_type<tc>, window_params = [{transform_indices = @transform_0, window_bounds = array<i64: 1, 128>}, {transform_indices = @transform_1, window_bounds = array<i64: 1, 128>}, {pipeline_mode = #tpu.pipeline_mode<synchronous>, transform_indices = @transform_2, window_bounds = array<i64: 256, 128>}, {pipeline_mode = #tpu.pipeline_mode<synchronous>, transform_indices = @transform_3, window_bounds = array<i64: 128, 256>}, {pipeline_mode = #tpu.pipeline_mode<synchronous>, transform_indices = @transform_4, window_bounds = array<i64: 128, 1>}, {transform_indices = @transform_5, window_bounds = array<i64: 128, 128>}]} {
    %0 = tpu.iota {dimensions = array<i32: 0>} : vector<128x128xi32>
    %c0 = arith.constant 0 : index
    %c0_0 = arith.constant 0 : index
    %1 = vector.load %arg1[%c0, %c0_0] : memref<1x128xi32, #tpu.memory_space<vmem>>, vector<1x128xi32>
    %c0_1 = arith.constant 0 : index
    %c0_2 = arith.constant 0 : index
    %2 = vector.load %arg2[%c0_1, %c0_2] : memref<1x128xi32, #tpu.memory_space<vmem>>, vector<1x128xi32>
    %c53_i32 = arith.constant 53 : i32
    %3 = vector.broadcast %c53_i32 : i32 to vector<1x128xi32>
    %4 = arith.addi %2, %3 : vector<1x128xi32>
    %5 = vector.broadcast %1 : vector<1x128xi32> to vector<128x128xi32>
    %6 = arith.cmpi eq, %0, %5 : vector<128x128xi32>
    %7 = vector.broadcast %4 : vector<1x128xi32> to vector<128x128xi32>
    %8 = arith.cmpi eq, %0, %7 : vector<128x128xi32>
    %9 = arith.ori %6, %8 : vector<128x128xi1>
    %c106_i32 = arith.constant 106 : i32
    %10 = vector.broadcast %c106_i32 : i32 to vector<128x128xi32>
    %11 = arith.cmpi eq, %0, %10 : vector<128x128xi32>
    %12 = arith.ori %9, %11 : vector<128x128xi1>
    %13 = arith.extui %12 : vector<128x128xi1> to vector<128x128xi32>
    %14 = arith.sitofp %13 : vector<128x128xi32> to vector<128x128xf32>
    %15 = arith.truncf %14 : vector<128x128xf32> to vector<128x128xbf16>
    %c0_3 = arith.constant 0 : index
    %c0_4 = arith.constant 0 : index
    %16 = vector.load %arg3[%c0_3, %c0_4] : memref<256x128xbf16, #tpu.memory_space<vmem>>, vector<256x128xbf16>
    %cst = arith.constant dense<0.000000e+00> : vector<256x128xf32>
    %17 = tpu.matmul %16, %15, %cst {dimension_numbers = #tpu.dot_dimension_numbers<[1], [0], [0], [1], [0, 0, 1, 1], [], []>} : vector<256x128xbf16>, vector<128x128xbf16>, vector<256x128xf32> -> vector<256x128xf32>
    %cst_5 = arith.constant 0.000000e+00 : f32
    %18 = vector.broadcast %cst_5 : f32 to vector<256x128xf32>
    %19 = arith.maximumf %17, %18 : vector<256x128xf32>
    %20 = arith.truncf %19 : vector<256x128xf32> to vector<256x128xbf16>
    %c0_6 = arith.constant 0 : index
    %c0_7 = arith.constant 0 : index
    %21 = vector.load %arg4[%c0_6, %c0_7] : memref<128x256xbf16, #tpu.memory_space<vmem>>, vector<128x256xbf16>
    %cst_8 = arith.constant dense<0.000000e+00> : vector<128x128xf32>
    %22 = tpu.matmul %21, %20, %cst_8 {dimension_numbers = #tpu.dot_dimension_numbers<[1], [0], [0], [1], [0, 0, 1, 1], [], []>} : vector<128x256xbf16>, vector<256x128xbf16>, vector<128x128xf32> -> vector<128x128xf32>
    %c0_9 = arith.constant 0 : index
    %c0_10 = arith.constant 0 : index
    %23 = vector.load %arg5[%c0_9, %c0_10] : memref<128x1xf32, #tpu.memory_space<vmem>>, vector<128x1xf32>
    %24 = vector.broadcast %23 : vector<128x1xf32> to vector<128x128xf32>
    %25 = arith.addf %22, %24 : vector<128x128xf32>
    %c0_11 = arith.constant 0 : index
    %c0_12 = arith.constant 0 : index
    %26 = vector.load %arg6[%c0_11, %c0_12] : memref<128x128xf32, #tpu.memory_space<vmem>>, vector<128x128xf32>
    tpu.vector_store %arg6[%c0_11, %c0_12], %25 {strides = array<i32>} : memref<128x128xf32, #tpu.memory_space<vmem>>, vector<128x128xf32>,
    return
  }
  func.func @transform_0(%arg0: i32) -> (i32, i32) {
    %c0_i32 = arith.constant 0 : i32
    %c0_i32_0 = arith.constant 0 : i32
    return %c0_i32, %arg0 : i32, i32
  }
  func.func @transform_1(%arg0: i32) -> (i32, i32) {
    %c0_i32 = arith.constant 0 : i32
    %c0_i32_0 = arith.constant 0 : i32
    return %c0_i32, %arg0 : i32, i32
  }
  func.func @transform_2(%arg0: i32) -> (i32, i32) {
    %c0_i32 = arith.constant 0 : i32
    %c0_i32_0 = arith.constant 0 : i32
    %c0_i32_1 = arith.constant 0 : i32
    return %c0_i32, %c0_i32_0 : i32, i32
  }
  func.func @transform_3(%arg0: i32) -> (i32, i32) {
    %c0_i32 = arith.constant 0 : i32
    %c0_i32_0 = arith.constant 0 : i32
    %c0_i32_1 = arith.constant 0 : i32
    return %c0_i32, %c0_i32_0 : i32, i32
  }
  func.func @transform_4(%arg0: i32) -> (i32, i32) {
    %c0_i32 = arith.constant 0 : i32
    %c0_i32_0 = arith.constant 0 : i32
    %c0_i32_1 = arith.constant 0 : i32
    return %c0_i32, %c0_i32_0 : i32, i32
  }
  func.func @transform_5(%arg0: i32) -> (i32, i32) {
    %c0_i32 = arith.constant 0 : i32
    %c0_i32_0 = arith.constant 0 : i32
    return %c0_i32, %arg0 : i32, i32
  }
}

</mosaic_0001>

<bundles_post_ra>
// kernel: embed_concat_ff.1
= control target key start
LH: loop header
LB: loop body
LE: loop exit
PB: predicated region body
PF: predicated region fallthrough
CT: control target
= control target key end

     0   :  { %10 = vsyncpa [#allocation3], 0  ;;  %s1600_s0 = inlined_call_operand.hbm [shape: s32[1,128], index: 0, kind: input, shape index: {}]   ;;  %s1601_s1 = inlined_call_operand.hbm [shape: s32[1,128], index: 1, kind: input, shape index: {}]   ;;  %s1602_s2 = inlined_call_operand.hbm [shape: bf16[256,128], index: 2, kind: input, shape index: {}]   ;;  %s1603_s3 = inlined_call_operand.hbm [shape: bf16[128,256], index: 3, kind: input, shape index: {}]   ;;  %s1604_s4 = inlined_call_operand.hbm [shape: f32[128,1], index: 4, kind: input, shape index: {}]   ;;  %s1605_s5 = inlined_call_operand.hbm [shape: f32[128,128], index: 5, kind: output, shape index: {}]  }
   0x1   :  { %11 = vsyncpa [#allocation6], 0 }
   0x2   :  { %12 = vsyncpa [#allocation9], 0 }
   0x3   :  { %13 = vsyncpa [#allocation4], 0  ;;  %s1290_s18 = smov [#allocation5]   ;;  %s1291_s20 = smov [#allocation8]  }
   0x4   :  { %s30_s19 = sshll.u32 %s1290_s18, 4  ;;  %s51_s21 = sshll.u32 %s1291_s20, 4  ;;  %s31_s19 = int_to_ptr.vmem [resolvable:$true] %s30_s19  ;;  %s1332_s21 = int_to_ptr.vmem [resolvable:$true] %s51_s21 }
   0x5   :  { %s1150_s24 = scalar_lea.hbm %s1601_s1, 16 }
   0x6   :  { %p1151_p0 = scmp.ne.s32.totalorder %s1601_s1, %s1150_s24  ;;  %p1154_p1 = scmp.lt.u32.totalorder %s1150_s24, %s1601_s1 }
   0x8   :  { %p1156_p2 = pnand %p1154_p1, %p1151_p0 }
   0xa   :  { %1159 = shalt.err (!%p1156_p2)
}
   0xb   :  { %s1160_s29 = scalar_lea.vmem %s31_s19, 16  ;;  %s1164_s30 = scalar_lea.vmem %s31_s19, 32 }
   0xc   :  { %p1161_p3 = scmp.ne.s32.totalorder %s31_s19, %s1160_s29  ;;  %p1165_p4 = scmp.lt.s32.totalorder %s31_s19, %s31_s19 }
   0xd   :  { %p1166_p5 = scmp.lt.s32.totalorder %s1164_s30, %s1160_s29 }
   0xf   :  { %p1167_p6 = por %p1166_p5, %p1165_p4 }
  0x11   :  { %p1168_p7 = pnand %p1167_p6, %p1161_p3 }
  0x13   :  { %1171 = shalt.err (!%p1168_p7)
}
  0x14   :  { %33 = dma.hbm_to_vmem [thread:$0]  %s1601_s1, 16, %s31_s19, [#allocation6]  }
  0x15   :  { %s1172_s10 = scalar_lea.hbm %s1603_s3, 2048 }
  0x16   :  { %p1173_p8 = scmp.ne.s32.totalorder %s1603_s3, %s1172_s10  ;;  %p1176_p9 = scmp.lt.u32.totalorder %s1172_s10, %s1603_s3 }
  0x18   :  { %p1178_p10 = pnand %p1176_p9, %p1173_p8 }
  0x1a   :  { %1181 = shalt.err (!%p1178_p10)
}
  0x1b   :  { %s1182_s15 = scalar_lea.vmem %s1332_s21, 2048  ;;  %p1187_p12 = scmp.lt.s32.totalorder %s1332_s21, %s1332_s21 }
  0x1c   :  { %p1183_p11 = scmp.ne.s32.totalorder %s1332_s21, %s1182_s15  ;;  %p1188_p13 = scmp.lt.s32.totalorder %s1182_s15, %s1182_s15 }
  0x1e   :  { %p1189_p0 = por %p1188_p13, %p1187_p12 }
  0x20   :  { %p1190_p1 = pnand %p1189_p0, %p1183_p11 }
  0x22   :  { %1193 = shalt.err (!%p1190_p1)
}
  0x23   :  { %s1292_s1 = smov 128   ;;  %s1293_s16 = smov 8  }
  0x24   :  { %57 = dma.hbm_to_vmem [thread:$0]  %s1603_s3, 2048, %s1332_s21, [#allocation9], %s1292_s1, %s1292_s1, %s1293_s16  }
  0x25   :  { %s1294_s19 = smov [#allocation2]   ;;  %s1295_s22 = smov [#allocation7]  }
  0x26   :  { %s20_s20 = sshll.u32 %s1294_s19, 4  ;;  %s39_s23 = sshll.u32 %s1295_s22, 4  ;;  %s21_s20 = int_to_ptr.vmem [resolvable:$true] %s20_s20  ;;  %s1366_s23 = int_to_ptr.vmem [resolvable:$true] %s39_s23 }
  0x27   :  { %s1194_s26 = scalar_lea.hbm %s1600_s0, 16 }
  0x28   :  { %p1195_p2 = scmp.ne.s32.totalorder %s1600_s0, %s1194_s26  ;;  %p1198_p3 = scmp.lt.u32.totalorder %s1194_s26, %s1600_s0 }
  0x2a   :  { %p1200_p4 = pnand %p1198_p3, %p1195_p2 }
  0x2c   :  { %1203 = shalt.err (!%p1200_p4)
}
  0x2d   :  { %s1204_s3 = scalar_lea.vmem %s21_s20, 16  ;;  %s1208_s21 = scalar_lea.vmem %s21_s20, 32 }
  0x2e   :  { %p1205_p5 = scmp.ne.s32.totalorder %s21_s20, %s1204_s3  ;;  %p1209_p6 = scmp.lt.s32.totalorder %s21_s20, %s21_s20 }
  0x2f   :  { %p1210_p7 = scmp.lt.s32.totalorder %s1208_s21, %s1204_s3 }
  0x31   :  { %p1211_p8 = por %p1210_p7, %p1209_p6 }
  0x33   :  { %p1212_p9 = pnand %p1211_p8, %p1205_p5 }
  0x35   :  { %1215 = shalt.err (!%p1212_p9)
}
  0x36   :  { %23 = dma.hbm_to_vmem [thread:$0]  %s1600_s0, 16, %s21_s20, [#allocation3]  }
  0x37   :  { %s1216_s10 = scalar_lea.hbm %s1602_s2, 2048 }
  0x38   :  { %p1217_p10 = scmp.ne.s32.totalorder %s1602_s2, %s1216_s10  ;;  %p1220_p11 = scmp.lt.u32.totalorder %s1216_s10, %s1602_s2 }
  0x3a   :  { %p1222_p12 = pnand %p1220_p11, %p1217_p10 }
  0x3c   :  { %1225 = shalt.err (!%p1222_p12)
}
  0x3d   :  { %s1226_s15 = scalar_lea.vmem %s1366_s23, 2048  ;;  %p1231_p0 = scmp.lt.s32.totalorder %s1366_s23, %s1366_s23 }
  0x3e   :  { %p1227_p13 = scmp.ne.s32.totalorder %s1366_s23, %s1226_s15  ;;  %p1232_p1 = scmp.lt.s32.totalorder %s1226_s15, %s1226_s15 }
  0x40   :  { %p1233_p2 = por %p1232_p1, %p1231_p0 }
  0x42   :  { %p1234_p3 = pnand %p1233_p2, %p1227_p13 }
  0x44   :  { %1237 = shalt.err (!%p1234_p3)
}
  0x45   :  { %s1296_s0 = smov 64   ;;  %s1297_s17 = smov 4  }
  0x46   :  { %45 = dma.hbm_to_vmem [thread:$0]  %s1602_s2, 2048, %s1366_s23, [#allocation6], %s1296_s0, %s1296_s0, %s1297_s17  }
  0x47   :  { %s1298_s20 = smov [#allocation10]   ;;  %s1238_s26 = scalar_lea.hbm %s1604_s4, 2048 }
  0x48   :  { %s63_s22 = sshll.u32 %s1298_s20, 4  ;;  %p1239_p4 = scmp.ne.s32.totalorder %s1604_s4, %s1238_s26  ;;  %s64_s22 = int_to_ptr.vmem [resolvable:$true] %s63_s22 }
  0x49   :  { %p1242_p5 = scmp.lt.u32.totalorder %s1238_s26, %s1604_s4 }
  0x4b   :  { %p1244_p6 = pnand %p1242_p5, %p1239_p4 }
  0x4d   :  { %1247 = shalt.err (!%p1244_p6)
}
  0x4e   :  { %s1248_s3 = scalar_lea.vmem %s64_s22, 2048  ;;  %p1253_p8 = scmp.lt.s32.totalorder %s64_s22, %s64_s22 }
  0x4f   :  { %p1249_p7 = scmp.ne.s32.totalorder %s64_s22, %s1248_s3  ;;  %p1254_p9 = scmp.lt.s32.totalorder %s1248_s3, %s1248_s3 }
  0x51   :  { %p1255_p10 = por %p1254_p9, %p1253_p8 }
  0x53   :  { %p1256_p11 = pnand %p1255_p10, %p1249_p7 }
  0x55   :  { %1259 = shalt.err (!%p1256_p11)
}
  0x56   :  { %69 = dma.hbm_to_vmem [thread:$0]  %s1604_s4, 2048, %s64_s22, [#allocation9], %s1292_s1, %s1292_s1, %s1293_s16  }
  0x57   :  { %1282 = dma.done.wait [#allocation3], 16  }
  0x58   :  { %1283 = vsyncadd [#allocation3], 4294967280 }
  0x59   :  { %1284 = dma.done.wait [#allocation6], 2064  }
  0x5a   :  { %1285 = vsyncadd [#allocation6], 4294965232 }
  0x5b   :  { %1286 = dma.done.wait [#allocation9], 4096  }
  0x5c   :  { %1287 = vsyncadd [#allocation9], 4294963200  ;;  %v86_v0 = vlaneseq  ;;  %v1416_v4 = vld [vmem:[#allocation2] ss:$0 sm:$0xff]  ;;  %v104_v5 = vld [vmem:[#allocation5] sm:$0x1] }
  0x5d   :  { %v105_v6 = vadd.s32 53, %v104_v5  ;;  %v1110_v7 = vld [vmem:[#allocation7] sm:$0xff]   ;;  %v1299_v15 = vmov 1.0|1.0   ;;  %v1111_v35 = vld [vmem:[#allocation7 + $0x8] sm:$0xff]   ;;  %v1112_v36 = vld [vmem:[#allocation7 + $0x10] sm:$0xff]  }
  0x5e   :  { %v1412_v1 = vshrl.u32 %v86_v0, 7  ;;  %1064 = vmatprep.mubr.bf16.mxu0 %v1110_v7  ;;  %v1113_v37 = vld [vmem:[#allocation7 + $0x18] sm:$0xff]   ;;  %v1114_v38 = vld [vmem:[#allocation7 + $0x20] sm:$0xff]   ;;  %v1115_v39 = vld [vmem:[#allocation7 + $0x28] sm:$0xff]   ;;  %v1300_v55 = vmov 0   ;;  %s1301_s4 = smov [#allocation11]  }
  0x5f   :  { %v1116_v40 = vld [vmem:[#allocation7 + $0x30] sm:$0xff]   ;;  %v1117_v41 = vld [vmem:[#allocation7 + $0x38] sm:$0xff]   ;;  %v1118_v42 = vld [vmem:[#allocation7 + $0x40] sm:$0xff]   ;;  %1108 = vset.pattern.permute.xlu0 %v1300_v55  ;;  %1109 = vset.pattern.permute.xlu1 %v1300_v55  ;;  %s881_s21 = sshll.u32 %s1301_s4, 4  ;;  %s882_s21 = int_to_ptr.vmem [resolvable:$true] %s881_s21 }
  0x60   :  { %v128_v2 = vsub.s32 0, %v1412_v1  ;;  %v88_v3 = vadd.s32 8, %v1412_v1  ;;  %v89_v8 = vadd.s32 16, %v1412_v1  ;;  %vm110_vm0 = vcmp.eq.s32.totalorder %v1412_v1, %v1416_v4  ;;  %v1119_v43 = vld [vmem:[#allocation7 + $0x48] sm:$0xff]   ;;  %v1120_v44 = vld [vmem:[#allocation7 + $0x50] sm:$0xff]   ;;  %v1121_v45 = vld [vmem:[#allocation7 + $0x58] sm:$0xff]   ;;  %p1265_p13 = scmp.lt.s32.totalorder %s882_s21, %s882_s21 }
  0x61   :  { %v90_v10 = vadd.s32 24, %v1412_v1  ;;  %v91_v11 = vadd.s32 32, %v1412_v1  ;;  %v92_v13 = vadd.s32 40, %v1412_v1  ;;  %v93_v14 = vadd.s32 48, %v1412_v1  ;;  %v1122_v46 = vld [vmem:[#allocation7 + $0x60] sm:$0xff]   ;;  %v1123_v47 = vld [vmem:[#allocation7 + $0x68] sm:$0xff]  }
  0x62   :  { %v1421_v9 = vrot.slane %v105_v6, %v128_v2  ;;  %vm111_vm1 = vcmp.eq.s32.totalorder %v88_v3, %v1416_v4  ;;  %vm112_vm5 = vcmp.eq.s32.totalorder %v89_v8, %v1416_v4  ;;  %v94_v17 = vadd.s32 56, %v1412_v1  ;;  %v1124_v48 = vld [vmem:[#allocation7 + $0x70] sm:$0xff]   ;;  %v1125_v49 = vld [vmem:[#allocation7 + $0x78] sm:$0xff]   ;;  %v1128_v50 = vld [vmem:[#allocation8 + $0x4] ss:$8 sps:$4 sm:$0xff]   ;;  %s1260_s6 = scalar_lea.vmem %s882_s21, 2048 }
  0x63   :  { %vm113_vm8 = vcmp.eq.s32.totalorder %v90_v10, %v1416_v4  ;;  %vm114_vm12 = vcmp.eq.s32.totalorder %v91_v11, %v1416_v4  ;;  %vm115_vm15 = vcmp.eq.s32.totalorder %v92_v13, %v1416_v4  ;;  %v95_v18 = vadd.s32 64, %v1412_v1  ;;  %795 = vmatprep.mubr.bf16.mxu1 %v1128_v50  ;;  %v587_v52 = vld [vmem:[#allocation10] sm:$0xff]  ;;  %v589_v53 = vld [vmem:[#allocation10 + $0x10] sm:$0xff]  ;;  %v588_v60 = vld [vmem:[#allocation10 + $0x8] sm:$0xff]  ;;  %p1261_p12 = scmp.ne.s32.totalorder %s882_s21, %s1260_s6  ;;  %p1266_p0 = scmp.lt.s32.totalorder %s1260_s6, %s1260_s6 }
  0x64   :  { %vm130_vm2 = vcmp.eq.s32.totalorder %v1412_v1, %v1421_v9  ;;  %vm131_vm3 = vcmp.eq.s32.totalorder %v88_v3, %v1421_v9  ;;  %vm132_vm6 = vcmp.eq.s32.totalorder %v89_v8, %v1421_v9  ;;  %vm133_vm9 = vcmp.eq.s32.totalorder %v90_v10, %v1421_v9  ;;  %605 = vperm.xlu0 %1108, %v587_v52   ;;  %v590_v61 = vld [vmem:[#allocation10 + $0x18] sm:$0xff]  ;;  %v592_v2 = vld [vmem:[#allocation10 + $0x28] sm:$0xff]  ;;  %v591_v3 = vld [vmem:[#allocation10 + $0x20] sm:$0xff] }
  0x65   :  { %vm1429_vm4 = vmor %vm110_vm0, %vm130_vm2  ;;  %vm134_vm13 = vcmp.eq.s32.totalorder %v91_v11, %v1421_v9  ;;  %vm135_vm0 = vcmp.eq.s32.totalorder %v92_v13, %v1421_v9  ;;  %v96_v20 = vadd.s32 72, %v1412_v1  ;;  %v97_v22 = vadd.s32 80, %v1412_v1  ;;  %615 = vperm.xlu1 %1109, %v589_v53   ;;  %v594_v10 = vld [vmem:[#allocation10 + $0x38] sm:$0xff]  ;;  %v593_v11 = vld [vmem:[#allocation10 + $0x30] sm:$0xff]  ;;  %p1267_p1 = por %p1266_p0, %p1265_p13 }
  0x66   :  { %vm147_vm7 = vmor %vm111_vm1, %vm131_vm3  ;;  %vm116_vm3 = vcmp.eq.s32.totalorder %v93_v14, %v1416_v4  ;;  %v98_v24 = vadd.s32 88, %v1412_v1  ;;  %v99_v26 = vadd.s32 96, %v1412_v1  ;;  %v100_v28 = vadd.s32 104, %v1412_v1  ;;  %v596_v16 = vld [vmem:[#allocation10 + $0x48] sm:$0xff]  ;;  %v597_v25 = vld [vmem:[#allocation10 + $0x50] sm:$0xff] }
  0x67   :  { %vm928_vm10 = vmpackc.low %vm147_vm7, %vm1429_vm4  ;;  %vm136_vm4 = vcmp.eq.s32.totalorder %v93_v14, %v1421_v9  ;;  %vm137_vm7 = vcmp.eq.s32.totalorder %v94_v17, %v1421_v9  ;;  %v101_v31 = vadd.s32 112, %v1412_v1  ;;  %v102_v33 = vadd.s32 120, %v1412_v1  ;;  %v600_v30 = vld [vmem:[#allocation10 + $0x68] sm:$0xff]  ;;  %p1268_p2 = pnand %p1267_p1, %p1261_p12 }
  0x68   :  { %1048 = vmatprep.subr.msk.bf16.mxu0 %vm928_vm10, %v1299_v15  ;;  %vm1442_vm11 = vmor %vm112_vm5, %vm132_vm6  ;;  %vm117_vm6 = vcmp.eq.s32.totalorder %v94_v17, %v1416_v4  ;;  %610 = vperm.xlu0 %1108, %v588_v60   ;;  %v595_v17 = vld [vmem:[#allocation10 + $0x40] sm:$0xff] }
  0x69   :  { %1049 = vmatpush3.bf16.msk.msra.mxu0 %vm928_vm10, %v1299_v15  ;;  %vm149_vm14 = vmor %vm113_vm8, %vm133_vm9  ;;  %vm118_vm10 = vcmp.eq.s32.totalorder %v95_v18, %v1416_v4  ;;  %620 = vperm.xlu1 %1109, %v590_v61  }
  0x6a   :  { %vm930_vm1 = vmpackc.low %vm149_vm14, %vm1442_vm11  ;;  %vm138_vm11 = vcmp.eq.s32.totalorder %v95_v18, %v1421_v9  ;;  %vm139_vm14 = vcmp.eq.s32.totalorder %v96_v20, %v1421_v9 }
  0x6b   :  { %1050 = vmatprep.subr.msk.bf16.mxu0 %vm930_vm1, %v1299_v15  ;;  %vm1456_vm2 = vmor %vm114_vm12, %vm134_vm13  ;;  %vm119_vm13 = vcmp.eq.s32.totalorder %v96_v20, %v1416_v4 }
  0x6c   :  { %vm1463_vm5 = vmor %vm115_vm15, %vm135_vm0  ;;  %625 = vperm.xlu0 %1108, %v591_v3  }
  0x6d   :  { %1051 = vmatpush3.bf16.msk.msra.mxu0 %vm930_vm1, %v1299_v15  ;;  %vm932_vm8 = vmpackc.low %vm1463_vm5, %vm1456_vm2  ;;  %vm120_vm1 = vcmp.eq.s32.totalorder %v97_v22, %v1416_v4  ;;  %vm140_vm2 = vcmp.eq.s32.totalorder %v97_v22, %v1421_v9  ;;  %vm141_vm5 = vcmp.eq.s32.totalorder %v98_v24, %v1421_v9  ;;  %630 = vperm.xlu1 %1109, %v592_v2  }
  0x6e   :  { %1052 = vmatprep.subr.msk.bf16.mxu0 %vm932_vm8, %v1299_v15  ;;  %vm1476_vm9 = vmor %vm116_vm3, %vm136_vm4  ;;  %vm121_vm4 = vcmp.eq.s32.totalorder %v98_v24, %v1416_v4  ;;  %v598_v24 = vld [vmem:[#allocation10 + $0x58] sm:$0xff] }
  0x6f   :  { %vm1483_vm12 = vmor %vm117_vm6, %vm137_vm7 }
  0x70   :  { %vm934_vm15 = vmpackc.low %vm1483_vm12, %vm1476_vm9  ;;  %vm175_vm12 = vcmp.eq.s32.totalorder %v100_v28, 106  ;;  %635 = vperm.xlu0 %1108, %v593_v11  }
  0x71   :  { %1053 = vmatpush3.bf16.msk.msra.mxu0 %vm932_vm8, %v1299_v15  ;;  %vm1495_vm0 = vmor %vm118_vm10, %vm138_vm11  ;;  %vm122_vm8 = vcmp.eq.s32.totalorder %v99_v26, %v1416_v4  ;;  %vm142_vm10 = vcmp.eq.s32.totalorder %v99_v26, %v1421_v9  ;;  %640 = vperm.xlu1 %1109, %v594_v10  }
  0x72   :  { %1054 = vmatprep.subr.msk.bf16.mxu0 %vm934_vm15, %v1299_v15  ;;  %vm1508_vm3 = vmor %vm119_vm13, %vm139_vm14  ;;  %vm123_vm13 = vcmp.eq.s32.totalorder %v100_v28, %v1416_v4  ;;  %vm143_vm14 = vcmp.eq.s32.totalorder %v100_v28, %v1421_v9 }
  0x73   :  { %vm936_vm6 = vmpackc.low %vm1508_vm3, %vm1495_vm0 }
  0x74   :  { %vm1518_vm7 = vmor %vm120_vm1, %vm140_vm2  ;;  %vm124_vm2 = vcmp.eq.s32.totalorder %v101_v31, %v1416_v4  ;;  %645 = vperm.xlu0 %1108, %v595_v17  }
  0x75   :  { %1055 = vmatpush3.bf16.msk.msra.mxu0 %vm934_vm15, %v1299_v15  ;;  %vm1531_vm11 = vmor %vm121_vm4, %vm141_vm5  ;;  %vm144_vm4 = vcmp.eq.s32.totalorder %v101_v31, %v1421_v9  ;;  %650 = vperm.xlu1 %1109, %v596_v16   ;;  %v599_v31 = vld [vmem:[#allocation10 + $0x60] sm:$0xff] }
  0x76   :  { %1056 = vmatprep.subr.msk.bf16.mxu0 %vm936_vm6, %v1299_v15  ;;  %vm938_vm9 = vmpackc.low %vm1531_vm11, %vm1518_vm7  ;;  %vm125_vm7 = vcmp.eq.s32.totalorder %v102_v33, %v1416_v4 }
  0x77   :  { %vm1548_vm15 = vmor %vm122_vm8, %vm142_vm10  ;;  %vm145_vm8 = vcmp.eq.s32.totalorder %v102_v33, %v1421_v9 }
  0x78   :  { %vm159_vm1 = vmor %vm123_vm13, %vm143_vm14  ;;  %655 = vperm.xlu0 %1108, %v597_v25   ;;  %v1135_v25 = vld [vmem:[#allocation8 + $0x34] ss:$8 sps:$4 sm:$0xff]  }
  0x79   :  { %1057 = vmatpush3.bf16.msk.msra.mxu0 %vm936_vm6, %v1299_v15  ;;  %vm191_vm5 = vmor %vm159_vm1, %vm175_vm12  ;;  %660 = vperm.xlu1 %1109, %v598_v24   ;;  %v1134_v24 = vld [vmem:[#allocation8 + $0x20] ss:$8 sps:$4 sm:$0xff]  }
  0x7a   :  { %1058 = vmatprep.subr.msk.bf16.mxu0 %vm938_vm9, %v1299_v15  ;;  %vm940_vm10 = vmpackc.low %vm191_vm5, %vm1548_vm15 }
  0x7b   :  { %vm160_vm11 = vmor %vm124_vm2, %vm144_vm4 }
  0x7c   :  { %vm161_vm13 = vmor %vm125_vm7, %vm145_vm8  ;;  %665 = vperm.xlu0 %1108, %v599_v31   ;;  %v1144_v31 = vld [vmem:[#allocation8 + $0x64] ss:$8 sps:$4 sm:$0xff]  }
  0x7d   :  { %1059 = vmatpush3.bf16.msk.msra.mxu0 %vm938_vm9, %v1299_v15  ;;  %vm942_vm14 = vmpackc.low %vm161_vm13, %vm160_vm11  ;;  %670 = vperm.xlu1 %1109, %v600_v30   ;;  %v1143_v30 = vld [vmem:[#allocation8 + $0x50] ss:$8 sps:$4 sm:$0xff]  }
  0x7e   :  { %1060 = vmatprep.subr.msk.bf16.mxu0 %vm940_vm10, %v1299_v15 }
  0x81   :  { %1061 = vmatpush3.bf16.msk.msra.mxu0 %vm940_vm10, %v1299_v15 }
  0x82   :  { %1062 = vmatprep.subr.msk.bf16.mxu0 %vm942_vm14, %v1299_v15 }
  0x85   :  { %1063 = vmatpush3.bf16.msk.msra.mxu0 %vm942_vm14, %v1299_v15 }
  0x88   :  { %1065 = vmatmul.mubr.bf16.vlgmr.msra.gmra.mrb[0].mxu0 %v1111_v35 }
  0x89   :  { %1068 = vmatprep.mubr.bf16.mxu0 %v1112_v36 }
  0x90   :  { %1069 = vmatmul.mubr.bf16.gmra.mrb[4].mxu0 %v1113_v37 }
  0x91   :  { %1072 = vmatprep.mubr.bf16.mxu0 %v1114_v38  ;;  %v602_v38 = vld [vmem:[#allocation10 + $0x78] sm:$0xff] }
  0x92   :  { %680 = vperm.xlu1 %1109, %v602_v38  }
  0x98   :  { %1073 = vmatmul.mubr.bf16.gmra.mrb[8].mxu0 %v1115_v39  ;;  %v601_v39 = vld [vmem:[#allocation10 + $0x70] sm:$0xff] }
  0x99   :  { %1076 = vmatprep.mubr.bf16.mxu0 %v1116_v40  ;;  %675 = vperm.xlu0 %1108, %v601_v39  }
  0xa0   :  { %1077 = vmatmul.mubr.bf16.gmra.mrb[12].mxu0 %v1117_v41 }
  0xa1   :  { %1080 = vmatprep.mubr.bf16.mxu0 %v1118_v42 }
  0xa8   :  { %1081 = vmatmul.mubr.bf16.gmra.mrb[16].mxu0 %v1119_v43 }
  0xa9   :  { %1084 = vmatprep.mubr.bf16.mxu0 %v1120_v44 }
  0xb0   :  { %1085 = vmatmul.mubr.bf16.gmra.mrb[20].mxu0 %v1121_v45 }
  0xb1   :  { %1088 = vmatprep.mubr.bf16.mxu0 %v1122_v46 }
  0xb8   :  { %1089 = vmatmul.mubr.bf16.gmra.mrb[24].mxu0 %v1123_v47 }
  0xb9   :  { %1092 = vmatprep.mubr.bf16.mxu0 %v1124_v48 }
  0xc0   :  { %1093 = vmatmul.mubr.bf16.gmra.mrb[28].mxu0 %v1125_v49 }
 0x15b   :  { %v1066_v51 = vpop.f32.mrb[0].mxu0 }
 0x15c   :  { %v396_v54 = vpop.f32.mrb[1].mxu0  ;;  %v525_v57 = vmax.f32 %v1066_v51, 0.0 }
 0x15d   :  { %v1067_v56 = vpop.f32.mrb[2].mxu0  ;;  %v523_v62 = vmax.f32 %v396_v54, 0.0 }
 0x15e   :  { %v526_v58 = vmax.f32 %v1067_v56, 0.0  ;;  %v399_v59 = vpop.f32.mrb[3].mxu0 }
 0x15f   :  { %v524_v63 = vmax.f32 %v399_v59, 0.0 }
 0x160   :  { %v1570_v0 = vpack.c.bf16 %v526_v58, %v525_v57 }
 0x161   :  { %v1572_v1 = vpack.c.bf16 %v524_v63, %v523_v62 }
 0x163   :  { %v1070_v4 = vpop.f32.mrb[4].mxu0 }
 0x164   :  { %v412_v5 = vpop.f32.mrb[5].mxu0  ;;  %v529_v7 = vmax.f32 %v1070_v4, 0.0 }
 0x165   :  { %v1071_v6 = vpop.f32.mrb[6].mxu0  ;;  %v527_v12 = vmax.f32 %v412_v5, 0.0 }
 0x166   :  { %v530_v8 = vmax.f32 %v1071_v6, 0.0  ;;  %v415_v9 = vpop.f32.mrb[7].mxu0 }
 0x167   :  { %v528_v13 = vmax.f32 %v415_v9, 0.0 }
 0x168   :  { %v1574_v14 = vpack.c.bf16 %v530_v8, %v529_v7 }
 0x169   :  { %v1576_v15 = vpack.c.bf16 %v528_v13, %v527_v12 }
 0x16b   :  { %v1074_v18 = vpop.f32.mrb[8].mxu0 }
 0x16c   :  { %v428_v19 = vpop.f32.mrb[9].mxu0  ;;  %v533_v21 = vmax.f32 %v1074_v18, 0.0 }
 0x16d   :  { %v1075_v20 = vpop.f32.mrb[10].mxu0  ;;  %v531_v26 = vmax.f32 %v428_v19, 0.0 }
 0x16e   :  { %v534_v22 = vmax.f32 %v1075_v20, 0.0  ;;  %v431_v23 = vpop.f32.mrb[11].mxu0 }
 0x16f   :  { %v532_v27 = vmax.f32 %v431_v23, 0.0  ;;  %v1132_v23 = vld [vmem:[#allocation8 + $0x24] ss:$8 sps:$4 sm:$0xff]  }
 0x170   :  { %v1578_v28 = vpack.c.bf16 %v534_v22, %v533_v21  ;;  %v1129_v21 = vld [vmem:[#allocation8 + $0x14] ss:$8 sps:$4 sm:$0xff]   ;;  %v1131_v22 = vld [vmem:[#allocation8 + $0x10] ss:$8 sps:$4 sm:$0xff]  }
 0x171   :  { %v559_v29 = vpack.c.bf16 %v532_v27, %v531_v26  ;;  %v1137_v26 = vld [vmem:[#allocation8 + $0x30] ss:$8 sps:$4 sm:$0xff]   ;;  %v1138_v27 = vld [vmem:[#allocation8 + $0x44] ss:$8 sps:$4 sm:$0xff]  }
 0x173   :  { %v1078_v32 = vpop.f32.mrb[12].mxu0 }
 0x174   :  { %v444_v33 = vpop.f32.mrb[13].mxu0  ;;  %v537_v35 = vmax.f32 %v1078_v32, 0.0  ;;  %v1146_v32 = vld [vmem:[#allocation8 + $0x60] ss:$8 sps:$4 sm:$0xff]  }
 0x175   :  { %v1079_v34 = vpop.f32.mrb[14].mxu0  ;;  %v535_v40 = vmax.f32 %v444_v33, 0.0  ;;  %v1147_v33 = vld [vmem:[#allocation8 + $0x74] ss:$8 sps:$4 sm:$0xff]  }
 0x176   :  { %v538_v36 = vmax.f32 %v1079_v34, 0.0  ;;  %v447_v37 = vpop.f32.mrb[15].mxu0  ;;  %v1149_v34 = vld [vmem:[#allocation8 + $0x70] ss:$8 sps:$4 sm:$0xff]  }
 0x177   :  { %v536_v41 = vmax.f32 %v447_v37, 0.0 }
 0x178   :  { %v562_v42 = vpack.c.bf16 %v538_v36, %v537_v35  ;;  %v606_v35 = vpop.permute.xlu0 %605 }
 0x179   :  { %v561_v43 = vpack.c.bf16 %v536_v41, %v535_v40 }
 0x17b   :  { %v1082_v44 = vpop.f32.mrb[16].mxu0 }
 0x17c   :  { %v460_v45 = vpop.f32.mrb[17].mxu0  ;;  %v541_v47 = vmax.f32 %v1082_v44, 0.0  ;;  %v611_v41 = vpop.permute.xlu0 %610 }
 0x17d   :  { %v1083_v46 = vpop.f32.mrb[18].mxu0  ;;  %v539_v50 = vmax.f32 %v460_v45, 0.0  ;;  %v616_v45 = vpop.permute.xlu1 %615 }
 0x17e   :  { %v542_v48 = vmax.f32 %v1083_v46, 0.0  ;;  %v463_v49 = vpop.f32.mrb[19].mxu0 }
 0x17f   :  { %v540_v51 = vmax.f32 %v463_v49, 0.0 }
 0x180   :  { %v564_v52 = vpack.c.bf16 %v542_v48, %v541_v47 }
 0x181   :  { %v563_v53 = vpack.c.bf16 %v540_v51, %v539_v50 }
 0x183   :  { %v1086_v54 = vpop.f32.mrb[20].mxu0  ;;  %984 = vmatprep.subr.bf16.mxu1 %v563_v53  ;;  %v621_v53 = vpop.permute.xlu1 %620 }
 0x184   :  { %v476_v55 = vpop.f32.mrb[21].mxu0  ;;  %985 = vmatpush3.bf16.msra.mxu1 %v1572_v1  ;;  %v545_v57 = vmax.f32 %v1086_v54, 0.0 }
 0x185   :  { %v1087_v56 = vpop.f32.mrb[22].mxu0  ;;  %986 = vmatprep.subr.bf16.mxu1 %v564_v52  ;;  %v543_v60 = vmax.f32 %v476_v55, 0.0 }
 0x186   :  { %v546_v58 = vmax.f32 %v1087_v56, 0.0  ;;  %v479_v59 = vpop.f32.mrb[23].mxu0 }
 0x187   :  { %v544_v61 = vmax.f32 %v479_v59, 0.0  ;;  %v626_v59 = vpop.permute.xlu0 %625 }
 0x188   :  { %v566_v62 = vpack.c.bf16 %v546_v58, %v545_v57  ;;  %987 = vmatpush3.bf16.msra.mxu1 %v1570_v0 }
 0x189   :  { %v565_v63 = vpack.c.bf16 %v544_v61, %v543_v60 }
 0x18b   :  { %v1090_v2 = vpop.f32.mrb[24].mxu0  ;;  %988 = vmatprep.subr.bf16.mxu1 %v565_v63  ;;  %v631_v63 = vpop.permute.xlu1 %630 }
 0x18c   :  { %v492_v3 = vpop.f32.mrb[25].mxu0  ;;  %989 = vmatpush3.bf16.msra.mxu1 %v1576_v15  ;;  %v549_v5 = vmax.f32 %v1090_v2, 0.0 }
 0x18d   :  { %v1091_v4 = vpop.f32.mrb[26].mxu0  ;;  %990 = vmatprep.subr.bf16.mxu1 %v566_v62  ;;  %v547_v7 = vmax.f32 %v492_v3, 0.0 }
 0x18e   :  { %v550_v1 = vmax.f32 %v1091_v4, 0.0  ;;  %v495_v6 = vpop.f32.mrb[27].mxu0 }
 0x18f   :  { %v548_v8 = vmax.f32 %v495_v6, 0.0  ;;  %v636_v6 = vpop.permute.xlu0 %635 }
 0x190   :  { %v568_v9 = vpack.c.bf16 %v550_v1, %v549_v5  ;;  %991 = vmatpush3.bf16.msra.mxu1 %v1574_v14  ;;  %v1126_v14 = vld [vmem:[#allocation8] ss:$8 sps:$4 sm:$0xff]  }
 0x191   :  { %v567_v10 = vpack.c.bf16 %v548_v8, %v547_v7 }
 0x193   :  { %v1094_v11 = vpop.f32.mrb[28].mxu0  ;;  %992 = vmatprep.subr.bf16.mxu1 %v567_v10  ;;  %v641_v10 = vpop.permute.xlu1 %640 }
 0x194   :  { %v508_v0 = vpop.f32.mrb[29].mxu0  ;;  %993 = vmatpush3.bf16.msra.mxu1 %v559_v29  ;;  %v553_v13 = vmax.f32 %v1094_v11, 0.0  ;;  %v1141_v29 = vld [vmem:[#allocation8 + $0x54] ss:$8 sps:$4 sm:$0xff]  }
 0x195   :  { %v1095_v12 = vpop.f32.mrb[30].mxu0  ;;  %994 = vmatprep.subr.bf16.mxu1 %v568_v9  ;;  %v551_v17 = vmax.f32 %v508_v0, 0.0 }
 0x196   :  { %v554_v16 = vmax.f32 %v1095_v12, 0.0  ;;  %v511_v15 = vpop.f32.mrb[31].mxu0 }
 0x197   :  { %v552_v18 = vmax.f32 %v511_v15, 0.0  ;;  %v646_v15 = vpop.permute.xlu0 %645 }
 0x198   :  { %v570_v19 = vpack.c.bf16 %v554_v16, %v553_v13  ;;  %995 = vmatpush3.bf16.msra.mxu1 %v1578_v28  ;;  %v1140_v28 = vld [vmem:[#allocation8 + $0x40] ss:$8 sps:$4 sm:$0xff]  }
 0x199   :  { %v569_v20 = vpack.c.bf16 %v552_v18, %v551_v17 }
 0x19b   :  { %996 = vmatprep.subr.bf16.mxu1 %v569_v20  ;;  %v651_v20 = vpop.permute.xlu1 %650 }
 0x19c   :  { %997 = vmatpush3.bf16.msra.mxu1 %v561_v43 }
 0x19d   :  { %998 = vmatprep.subr.bf16.mxu1 %v570_v19 }
 0x1a0   :  { %999 = vmatpush3.bf16.msra.mxu1 %v562_v42 }
 0x1a3   :  { %796 = vmatmul.mubr.bf16.vlgmr.msra.gmra.mrb[0].mxu1 %v1126_v14 }
 0x1a4   :  { %803 = vmatprep.mubr.bf16.mxu1 %v1129_v21 }
 0x1ab   :  { %804 = vmatmul.mubr.bf16.gmra.mrb[4].mxu1 %v1131_v22 }
 0x1ac   :  { %811 = vmatprep.mubr.bf16.mxu1 %v1132_v23 }
 0x1b3   :  { %812 = vmatmul.mubr.bf16.gmra.mrb[8].mxu1 %v1134_v24 }
 0x1b4   :  { %819 = vmatprep.mubr.bf16.mxu1 %v1135_v25  ;;  %v656_v25 = vpop.permute.xlu0 %655 }
 0x1bb   :  { %820 = vmatmul.mubr.bf16.gmra.mrb[12].mxu1 %v1137_v26 }
 0x1bc   :  { %827 = vmatprep.mubr.bf16.mxu1 %v1138_v27 }
 0x1c3   :  { %828 = vmatmul.mubr.bf16.gmra.mrb[16].mxu1 %v1140_v28 }
 0x1c4   :  { %835 = vmatprep.mubr.bf16.mxu1 %v1141_v29  ;;  %v661_v29 = vpop.permute.xlu1 %660 }
 0x1cb   :  { %836 = vmatmul.mubr.bf16.gmra.mrb[20].mxu1 %v1143_v30 }
 0x1cc   :  { %843 = vmatprep.mubr.bf16.mxu1 %v1144_v31 }
 0x1d3   :  { %844 = vmatmul.mubr.bf16.gmra.mrb[24].mxu1 %v1146_v32 }
 0x1d4   :  { %851 = vmatprep.mubr.bf16.mxu1 %v1147_v33 }
 0x1db   :  { %852 = vmatmul.mubr.bf16.gmra.mrb[28].mxu1 %v1149_v34 }
 0x276   :  { %v1000_v36 = vpop.f32.mrb[0].mxu1 }
 0x277   :  { %v1001_v37 = vpop.f32.mrb[1].mxu1 }
 0x278   :  { %v1002_v38 = vadd.f32 %v1001_v37, %v1000_v36  ;;  %v1003_v39 = vpop.f32.mrb[2].mxu1 }
 0x279   :  { %v1004_v40 = vpop.f32.mrb[3].mxu1 }
 0x27a   :  { %v798_v42 = vadd.f32 %v1002_v38, %v606_v35  ;;  %v1005_v43 = vadd.f32 %v1004_v40, %v1003_v39  ;;  %v666_v35 = vpop.permute.xlu0 %665  ;;  %v671_v39 = vpop.permute.xlu1 %670 }
 0x27c   :  { %860 = vst [vmem:[#allocation11] sm:$0xff] %v798_v42  ;;  %v801_v44 = vadd.f32 %v1005_v43, %v611_v41 }
 0x27e   :  { %861 = vst [vmem:[#allocation11 + $0x8] sm:$0xff] %v801_v44  ;;  %v1006_v46 = vpop.f32.mrb[4].mxu1 }
 0x27f   :  { %v1007_v47 = vpop.f32.mrb[5].mxu1 }
 0x280   :  { %v1008_v48 = vadd.f32 %v1007_v47, %v1006_v46  ;;  %v1009_v49 = vpop.f32.mrb[6].mxu1 }
 0x281   :  { %v1010_v50 = vpop.f32.mrb[7].mxu1 }
 0x282   :  { %v806_v51 = vadd.f32 %v1008_v48, %v616_v45  ;;  %v1011_v52 = vadd.f32 %v1010_v50, %v1009_v49  ;;  %v676_v45 = vpop.permute.xlu0 %675  ;;  %v681_v49 = vpop.permute.xlu1 %680 }
 0x284   :  { %862 = vst [vmem:[#allocation11 + $0x10] sm:$0xff] %v806_v51  ;;  %v809_v54 = vadd.f32 %v1011_v52, %v621_v53 }
 0x286   :  { %863 = vst [vmem:[#allocation11 + $0x18] sm:$0xff] %v809_v54  ;;  %v1012_v55 = vpop.f32.mrb[8].mxu1 }
 0x287   :  { %v1013_v56 = vpop.f32.mrb[9].mxu1 }
 0x288   :  { %v1014_v57 = vadd.f32 %v1013_v56, %v1012_v55  ;;  %v1015_v58 = vpop.f32.mrb[10].mxu1 }
 0x289   :  { %v1016_v60 = vpop.f32.mrb[11].mxu1 }
 0x28a   :  { %v814_v61 = vadd.f32 %v1014_v57, %v626_v59  ;;  %v1017_v62 = vadd.f32 %v1016_v60, %v1015_v58 }
 0x28c   :  { %864 = vst [vmem:[#allocation11 + $0x20] sm:$0xff] %v814_v61  ;;  %v817_v2 = vadd.f32 %v1017_v62, %v631_v63 }
 0x28e   :  { %865 = vst [vmem:[#allocation11 + $0x28] sm:$0xff] %v817_v2  ;;  %v1018_v3 = vpop.f32.mrb[12].mxu1 }
 0x28f   :  { %v1019_v4 = vpop.f32.mrb[13].mxu1 }
 0x290   :  { %v1020_v5 = vadd.f32 %v1019_v4, %v1018_v3  ;;  %v1021_v1 = vpop.f32.mrb[14].mxu1 }
 0x291   :  { %v1022_v7 = vpop.f32.mrb[15].mxu1 }
 0x292   :  { %v822_v8 = vadd.f32 %v1020_v5, %v636_v6  ;;  %v1023_v9 = vadd.f32 %v1022_v7, %v1021_v1 }
 0x294   :  { %866 = vst [vmem:[#allocation11 + $0x30] sm:$0xff] %v822_v8  ;;  %v825_v11 = vadd.f32 %v1023_v9, %v641_v10 }
 0x296   :  { %867 = vst [vmem:[#allocation11 + $0x38] sm:$0xff] %v825_v11  ;;  %v1024_v0 = vpop.f32.mrb[16].mxu1 }
 0x297   :  { %v1025_v12 = vpop.f32.mrb[17].mxu1 }
 0x298   :  { %v1026_v13 = vadd.f32 %v1025_v12, %v1024_v0  ;;  %v1027_v16 = vpop.f32.mrb[18].mxu1 }
 0x299   :  { %v1028_v17 = vpop.f32.mrb[19].mxu1 }
 0x29a   :  { %v830_v18 = vadd.f32 %v1026_v13, %v646_v15  ;;  %v1029_v19 = vadd.f32 %v1028_v17, %v1027_v16 }
 0x29c   :  { %868 = vst [vmem:[#allocation11 + $0x40] sm:$0xff] %v830_v18  ;;  %v833_v14 = vadd.f32 %v1029_v19, %v651_v20 }
 0x29e   :  { %869 = vst [vmem:[#allocation11 + $0x48] sm:$0xff] %v833_v14  ;;  %v1030_v21 = vpop.f32.mrb[20].mxu1 }
 0x29f   :  { %v1031_v22 = vpop.f32.mrb[21].mxu1 }
 0x2a0   :  { %v1032_v23 = vadd.f32 %v1031_v22, %v1030_v21  ;;  %v1033_v24 = vpop.f32.mrb[22].mxu1 }
 0x2a1   :  { %v1034_v26 = vpop.f32.mrb[23].mxu1 }
 0x2a2   :  { %v838_v27 = vadd.f32 %v1032_v23, %v656_v25  ;;  %v1035_v28 = vadd.f32 %v1034_v26, %v1033_v24 }
 0x2a4   :  { %870 = vst [vmem:[#allocation11 + $0x50] sm:$0xff] %v838_v27  ;;  %v841_v30 = vadd.f32 %v1035_v28, %v661_v29 }
 0x2a6   :  { %871 = vst [vmem:[#allocation11 + $0x58] sm:$0xff] %v841_v30  ;;  %v1036_v31 = vpop.f32.mrb[24].mxu1 }
 0x2a7   :  { %v1037_v32 = vpop.f32.mrb[25].mxu1 }
 0x2a8   :  { %v1038_v33 = vadd.f32 %v1037_v32, %v1036_v31  ;;  %v1039_v34 = vpop.f32.mrb[26].mxu1 }
 0x2a9   :  { %v1040_v36 = vpop.f32.mrb[27].mxu1 }
 0x2aa   :  { %v846_v37 = vadd.f32 %v1038_v33, %v666_v35  ;;  %v1041_v38 = vadd.f32 %v1040_v36, %v1039_v34 }
 0x2ac   :  { %872 = vst [vmem:[#allocation11 + $0x60] sm:$0xff] %v846_v37  ;;  %v849_v40 = vadd.f32 %v1041_v38, %v671_v39 }
 0x2ae   :  { %873 = vst [vmem:[#allocation11 + $0x68] sm:$0xff] %v849_v40  ;;  %v1042_v41 = vpop.f32.mrb[28].mxu1 }
 0x2af   :  { %v1043_v42 = vpop.f32.mrb[29].mxu1 }
 0x2b0   :  { %v1044_v43 = vadd.f32 %v1043_v42, %v1042_v41  ;;  %v1045_v44 = vpop.f32.mrb[30].mxu1 }
 0x2b1   :  { %v1046_v46 = vpop.f32.mrb[31].mxu1 }
 0x2b2   :  { %v854_v47 = vadd.f32 %v1044_v43, %v676_v45  ;;  %v1047_v48 = vadd.f32 %v1046_v46, %v1045_v44 }
 0x2b4   :  { %874 = vst [vmem:[#allocation11 + $0x70] sm:$0xff] %v854_v47  ;;  %v857_v50 = vadd.f32 %v1047_v48, %v681_v49 }
 0x2b6   :  { %875 = vst [vmem:[#allocation11 + $0x78] sm:$0xff] %v857_v50 }
 0x2b7   :  { %1271 = shalt.err (!%p1268_p2)
}
 0x2b8   :  { %s1272_s9 = scalar_lea.hbm %s1605_s5, 2048 }
 0x2b9   :  { %p1273_p3 = scmp.ne.s32.totalorder %s1605_s5, %s1272_s9  ;;  %p1276_p4 = scmp.lt.u32.totalorder %s1272_s9, %s1605_s5 }
 0x2bb   :  { %p1278_p5 = pnand %p1276_p4, %p1273_p3 }
 0x2bd   :  { %1281 = shalt.err (!%p1278_p5)
}
 0x2be   :  { %887 = dma.vmem_to_hbm [thread:$0]  %s882_s21, 2048, %s1605_s5, [#allocation4], %s1292_s1, %s1292_s1, %s1293_s16  }
 0x2bf   :  { %1288 = dma.done.wait [#allocation4], 2048  }
 0x2c0   :  { %1289 = vsyncadd [#allocation4], 4294965248 }
 0x2c1   :  { %891 = vsyncpa [#allocation3], 1 }
 0x2c2   :  { %892 = vsyncpa [#allocation6], 1 }
 0x2c3   :  { %893 = vsyncpa [#allocation9], 1 }
 0x2c4   :  { %894 = vsyncpa [#allocation4], 1 }

</bundles_post_ra>
